<compile_context>
chip_gen: v7x
topology: tpu7x:2x2x1
jax: 0.10.0
libtpu: 0.0.40
codegen_flags: <defaults>
</compile_context>

<pallas_src>
import functools
import math

import jax
import jax.numpy as jnp
from jax import lax
from jax.experimental import pallas as pl
from jax.experimental.pallas import tpu as pltpu

F_IN = 100  # GAMLP(100, 100)


def make_quaternion_mul(kernel):
    """JAX port of the torch helper. kernel: (in//4, out) with out % 4 == 0."""
    dim = kernel.shape[1] // 4
    r, i, j, k = jnp.split(kernel, 4, axis=1)
    r2 = jnp.concatenate([r, -i, -j, -k], axis=0)
    i2 = jnp.concatenate([i, r, -k, j], axis=0)
    j2 = jnp.concatenate([j, k, r, -i], axis=0)
    k2 = jnp.concatenate([k, -j, i, r], axis=0)
    hamilton = jnp.concatenate([r2, i2, j2, k2], axis=1)
    assert kernel.shape[1] == hamilton.shape[1]
    return hamilton


def _round_up(x, m):
    return ((x + m - 1) // m) * m


def _layer_stack(acc_ref, w_ref, unroll):
    """Run all L residual-GAMLP layers on the f32 accumulator ref (in place)."""
    num_layers = w_ref.shape[0]

    def one_layer(l, carry):
        h = acc_ref[...]                                   # f32 residual stream
        # MXU matmul: bf16 operands, f32 accumulation (as in the streamed spec).
        s = jnp.dot(h.astype(jnp.bfloat16), w_ref[l],
                    preferred_element_type=jnp.float32)
        acc_ref[...] = h + jnp.maximum(s, 0.0)             # ReLU + residual (VPU, f32)
        return carry

    if unroll:
        # Small L: static unroll gives the LLO scheduler full visibility.
        for l in range(num_layers):
            one_layer(l, 0)
    else:
        # Deep stacks: keep code size / vreg live ranges flat.
        lax.fori_loop(0, num_layers, one_layer, 0)


def _transmlp_kernel_inplace(x_ref, w_ref, o_ref, *, unroll):
    """f32 output path: accumulate the residual stream directly in o_ref.

    x_ref: (TM, 100) f32   input row tile
    w_ref: (L, 100, 100) bf16  full hamilton stack (VMEM resident)
    o_ref: (TM, 100) f32   output row tile == residual accumulator
    """
    o_ref[...] = x_ref[...].astype(jnp.float32)
    _layer_stack(o_ref, w_ref, unroll)


def _transmlp_kernel_scratch(x_ref, w_ref, o_ref, h_ref, *, unroll):
    """Narrow-output path (e.g. bf16): f32 residual stream in VMEM scratch."""
    h_ref[...] = x_ref[...].astype(jnp.float32)
    _layer_stack(h_ref, w_ref, unroll)
    o_ref[...] = h_ref[...].astype(o_ref.dtype)


@functools.partial(jax.jit, static_argnames=("tm", "out_dtype"))
def transmlp_forward(x, weights, *, tm=1024, out_dtype=jnp.float32):
    """x: (N, 100) float, weights: (L, 25, 100) f32 -> (N, 100) out_dtype."""
    n, f_in = x.shape
    num_layers, wq, f_out = weights.shape
    assert f_in == F_IN and f_out == F_IN and wq * 4 == f_in

    # Hamilton construction is cheap concat/negate glue; once per jitted call.
    # Streamed to the MXU as bf16 (weights stay VMEM resident: L * ~20 KiB).
    ham = jax.vmap(make_quaternion_mul)(weights.astype(jnp.float32))
    ham = ham.astype(jnp.bfloat16)                          # (L, 100, 100)

    x = x.astype(jnp.float32)

    # Row tiling: large tiles to amortize the ~0.35 us per-grid-step overhead,
    # but always >= 2 tiles so the "parallel" axis populates both v7x TensorCores.
    tm_eff = max(8, min(tm, _round_up(-(-n // 2), 8)))
    n_pad = _round_up(n, tm_eff)
    if n_pad != n:
        # Only triggers when N is not a multiple of the tile (never in the demo).
        x = jnp.pad(x, ((0, n_pad - n), (0, 0)))

    unroll = num_layers <= 8
    grid = (n_pad // tm_eff,)

    out_dt = jnp.dtype(out_dtype)
    cost = pl.CostEstimate(
        flops=2 * n_pad * f_in * f_out * num_layers,
        transcendentals=0,
        bytes_accessed=n_pad * f_in * 4 + ham.size * 2 + n_pad * f_out * out_dt.itemsize,
    )

    if out_dt == jnp.dtype(jnp.float32):
        kernel = functools.partial(_transmlp_kernel_inplace, unroll=unroll)
        scratch_shapes = []
    else:
        kernel = functools.partial(_transmlp_kernel_scratch, unroll=unroll)
        scratch_shapes = [pltpu.VMEM((tm_eff, f_in), jnp.float32)]

    out = pl.pallas_call(
        kernel,
        out_shape=jax.ShapeDtypeStruct((n_pad, f_out), out_dt),
        grid_spec=pltpu.PrefetchScalarGridSpec(
            num_scalar_prefetch=0,
            grid=grid,
            in_specs=[
                # Feature dim == full array extent (100) -> legal block, no padding pass.
                pl.BlockSpec((tm_eff, f_in), lambda i: (i, 0)),
                # Full hamilton stack, constant block index -> fetched once, stays in VMEM.
                pl.BlockSpec((num_layers, f_in, f_out), lambda i: (0, 0, 0)),
            ],
            out_specs=pl.BlockSpec((tm_eff, f_out), lambda i: (i, 0)),
            scratch_shapes=scratch_shapes,
        ),
        compiler_params=pltpu.CompilerParams(
            dimension_semantics=("parallel",),   # independent row tiles -> v7x megacore
        ),
        cost_estimate=cost,
    )(x, ham)

    return out if n_pad == n else out[:n]


def init_params(key, num_layers):
    """Deterministic per-layer GAMLP(100, 100) weights (reset_parameters scale)."""
    w_shape = (num_layers, F_IN // 4, F_IN)  # (L, 25, 100)
    stdv = math.sqrt(6.0 / (w_shape[1] + w_shape[2]))
    return jax.random.uniform(key, w_shape, dtype=jnp.float32,
                              minval=-stdv, maxval=stdv)


def reference_forward(x, weights, matmul_dtype=jnp.bfloat16):
    """Pure-JAX reference. matmul_dtype=bf16 mirrors the kernel's streamed numerics."""
    h = x.astype(jnp.float32)
    for l in range(weights.shape[0]):
        ham = make_quaternion_mul(weights[l].astype(jnp.float32)).astype(matmul_dtype)
        s = jnp.dot(h.astype(matmul_dtype), ham, preferred_element_type=jnp.float32)
        h = h + jnp.maximum(s, 0.0)
    return h


if __name__ == "__main__":
    key = jax.random.PRNGKey(0)
    k_w, k_x = jax.random.split(key)

    num_layers = 4
    n = 256  # multi-tile grid: tm_eff = 128 -> grid = (2,)

    weights = init_params(k_w, num_layers)                      # (4, 25, 100)
    x = jax.random.normal(k_x, (n, F_IN), dtype=jnp.float32)    # (256, 100)

    # Default f32-output path (module semantics).
    y = transmlp_forward(x, weights, tm=1024)
    y = jax.block_until_ready(y)
    assert y.shape == (n, F_IN)
    assert y.dtype == jnp.float32

    # Tight check against the numerics-matched reference (f32 residual stream,
    # bf16 matmul operands, f32 accumulation) -- this is the kernel's contract.
    y_ref_bf16 = reference_forward(x, weights, matmul_dtype=jnp.bfloat16)
    max_diff = float(jnp.max(jnp.abs(y - y_ref_bf16)))
    assert jnp.allclose(y, y_ref_bf16, atol=1e-2, rtol=1e-2), max_diff

    # Loose sanity check against the pure-f32 module semantics (relative norm,
    # robust to the bf16 operand rounding that compounds with depth).
    y_ref_f32 = reference_forward(x, weights, matmul_dtype=jnp.float32)
    rel = float(jnp.linalg.norm(y - y_ref_f32) / jnp.linalg.norm(y_ref_f32))
    assert rel < 0.1, rel

    # Optional bf16-output path (halves writeback bytes): only one extra final rounding.
    y_bf16 = transmlp_forward(x, weights, tm=1024, out_dtype=jnp.bfloat16)
    y_bf16 = jax.block_until_ready(y_bf16)
    assert y_bf16.dtype == jnp.bfloat16
    assert jnp.allclose(y_bf16.astype(jnp.float32), y, atol=1e-2, rtol=1e-2)

    print("KERNEL_OK")
</pallas_src>

<mosaic_0001>
module attributes {stable_mosaic.version = 11 : i64} {
  func.func @_transmlp_kernel_inplace(%arg0: i32, %arg1: memref<128x100xf32, #tpu.memory_space<vmem>>, %arg2: memref<4x100x100xbf16, #tpu.memory_space<vmem>>, %arg3: memref<128x100xf32, #tpu.memory_space<vmem>>) attributes {dimension_semantics = [#tpu.dimension_semantics<parallel>], iteration_bounds = array<i64: 2>, scalar_prefetch = 0 : i64, scratch_operands = 0 : i64, tpu.core_type = #tpu.core_type<tc>, window_params = [{transform_indices = @transform_0, window_bounds = array<i64: 128, 100>}, {pipeline_mode = #tpu.pipeline_mode<synchronous>, transform_indices = @transform_1, window_bounds = array<i64: 4, 100, 100>}, {transform_indices = @transform_2, window_bounds = array<i64: 128, 100>}]} {
    %c0 = arith.constant 0 : index
    %c0_0 = arith.constant 0 : index
    %0 = vector.load %arg1[%c0, %c0_0] : memref<128x100xf32, #tpu.memory_space<vmem>>, vector<128x100xf32>
    %c0_1 = arith.constant 0 : index
    %c0_2 = arith.constant 0 : index
    %1 = vector.load %arg3[%c0_1, %c0_2] : memref<128x100xf32, #tpu.memory_space<vmem>>, vector<128x100xf32>
    tpu.vector_store %arg3[%c0_1, %c0_2], %0 {strides = array<i32>} : memref<128x100xf32, #tpu.memory_space<vmem>>, vector<128x100xf32>,
    %c0_3 = arith.constant 0 : index
    %c0_4 = arith.constant 0 : index
    %2 = vector.load %arg3[%c0_3, %c0_4] : memref<128x100xf32, #tpu.memory_space<vmem>>, vector<128x100xf32>
    %3 = arith.truncf %2 : vector<128x100xf32> to vector<128x100xbf16>
    %c0_5 = arith.constant 0 : index
    %c0_6 = arith.constant 0 : index
    %c0_7 = arith.constant 0 : index
    %4 = vector.load %arg2[%c0_5, %c0_6, %c0_7] : memref<4x100x100xbf16, #tpu.memory_space<vmem>>, vector<1x100x100xbf16>
    %5 = vector.shape_cast %4 : vector<1x100x100xbf16> to vector<100x100xbf16>
    %cst = arith.constant dense<0.000000e+00> : vector<128x100xf32>
    %6 = tpu.matmul %3, %5, %cst {dimension_numbers = #tpu.dot_dimension_numbers<[1], [0], [0], [1], [0, 0, 1, 1], [], []>} : vector<128x100xbf16>, vector<100x100xbf16>, vector<128x100xf32> -> vector<128x100xf32>
    %cst_8 = arith.constant 0.000000e+00 : f32
    %7 = vector.broadcast %cst_8 : f32 to vector<128x100xf32>
    %8 = arith.maximumf %6, %7 : vector<128x100xf32>
    %9 = arith.addf %2, %8 : vector<128x100xf32>
    %c0_9 = arith.constant 0 : index
    %c0_10 = arith.constant 0 : index
    %10 = vector.load %arg3[%c0_9, %c0_10] : memref<128x100xf32, #tpu.memory_space<vmem>>, vector<128x100xf32>
    tpu.vector_store %arg3[%c0_9, %c0_10], %9 {strides = array<i32>} : memref<128x100xf32, #tpu.memory_space<vmem>>, vector<128x100xf32>,
    %c0_11 = arith.constant 0 : index
    %c0_12 = arith.constant 0 : index
    %11 = vector.load %arg3[%c0_11, %c0_12] : memref<128x100xf32, #tpu.memory_space<vmem>>, vector<128x100xf32>
    %12 = arith.truncf %11 : vector<128x100xf32> to vector<128x100xbf16>
    %c1 = arith.constant 1 : index
    %c0_13 = arith.constant 0 : index
    %c0_14 = arith.constant 0 : index
    %13 = vector.load %arg2[%c1, %c0_13, %c0_14] : memref<4x100x100xbf16, #tpu.memory_space<vmem>>, vector<1x100x100xbf16>
    %14 = vector.shape_cast %13 : vector<1x100x100xbf16> to vector<100x100xbf16>
    %cst_15 = arith.constant dense<0.000000e+00> : vector<128x100xf32>
    %15 = tpu.matmul %12, %14, %cst_15 {dimension_numbers = #tpu.dot_dimension_numbers<[1], [0], [0], [1], [0, 0, 1, 1], [], []>} : vector<128x100xbf16>, vector<100x100xbf16>, vector<128x100xf32> -> vector<128x100xf32>
    %cst_16 = arith.constant 0.000000e+00 : f32
    %16 = vector.broadcast %cst_16 : f32 to vector<128x100xf32>
    %17 = arith.maximumf %15, %16 : vector<128x100xf32>
    %18 = arith.addf %11, %17 : vector<128x100xf32>
    %c0_17 = arith.constant 0 : index
    %c0_18 = arith.constant 0 : index
    %19 = vector.load %arg3[%c0_17, %c0_18] : memref<128x100xf32, #tpu.memory_space<vmem>>, vector<128x100xf32>
    tpu.vector_store %arg3[%c0_17, %c0_18], %18 {strides = array<i32>} : memref<128x100xf32, #tpu.memory_space<vmem>>, vector<128x100xf32>,
    %c0_19 = arith.constant 0 : index
    %c0_20 = arith.constant 0 : index
    %20 = vector.load %arg3[%c0_19, %c0_20] : memref<128x100xf32, #tpu.memory_space<vmem>>, vector<128x100xf32>
    %21 = arith.truncf %20 : vector<128x100xf32> to vector<128x100xbf16>
    %c2 = arith.constant 2 : index
    %c0_21 = arith.constant 0 : index
    %c0_22 = arith.constant 0 : index
    %22 = vector.load %arg2[%c2, %c0_21, %c0_22] : memref<4x100x100xbf16, #tpu.memory_space<vmem>>, vector<1x100x100xbf16>
    %23 = vector.shape_cast %22 : vector<1x100x100xbf16> to vector<100x100xbf16>
    %cst_23 = arith.constant dense<0.000000e+00> : vector<128x100xf32>
    %24 = tpu.matmul %21, %23, %cst_23 {dimension_numbers = #tpu.dot_dimension_numbers<[1], [0], [0], [1], [0, 0, 1, 1], [], []>} : vector<128x100xbf16>, vector<100x100xbf16>, vector<128x100xf32> -> vector<128x100xf32>
    %cst_24 = arith.constant 0.000000e+00 : f32
    %25 = vector.broadcast %cst_24 : f32 to vector<128x100xf32>
    %26 = arith.maximumf %24, %25 : vector<128x100xf32>
    %27 = arith.addf %20, %26 : vector<128x100xf32>
    %c0_25 = arith.constant 0 : index
    %c0_26 = arith.constant 0 : index
    %28 = vector.load %arg3[%c0_25, %c0_26] : memref<128x100xf32, #tpu.memory_space<vmem>>, vector<128x100xf32>
    tpu.vector_store %arg3[%c0_25, %c0_26], %27 {strides = array<i32>} : memref<128x100xf32, #tpu.memory_space<vmem>>, vector<128x100xf32>,
    %c0_27 = arith.constant 0 : index
    %c0_28 = arith.constant 0 : index
    %29 = vector.load %arg3[%c0_27, %c0_28] : memref<128x100xf32, #tpu.memory_space<vmem>>, vector<128x100xf32>
    %30 = arith.truncf %29 : vector<128x100xf32> to vector<128x100xbf16>
    %c3 = arith.constant 3 : index
    %c0_29 = arith.constant 0 : index
    %c0_30 = arith.constant 0 : index
    %31 = vector.load %arg2[%c3, %c0_29, %c0_30] : memref<4x100x100xbf16, #tpu.memory_space<vmem>>, vector<1x100x100xbf16>
    %32 = vector.shape_cast %31 : vector<1x100x100xbf16> to vector<100x100xbf16>
    %cst_31 = arith.constant dense<0.000000e+00> : vector<128x100xf32>
    %33 = tpu.matmul %30, %32, %cst_31 {dimension_numbers = #tpu.dot_dimension_numbers<[1], [0], [0], [1], [0, 0, 1, 1], [], []>} : vector<128x100xbf16>, vector<100x100xbf16>, vector<128x100xf32> -> vector<128x100xf32>
    %cst_32 = arith.constant 0.000000e+00 : f32
    %34 = vector.broadcast %cst_32 : f32 to vector<128x100xf32>
    %35 = arith.maximumf %33, %34 : vector<128x100xf32>
    %36 = arith.addf %29, %35 : vector<128x100xf32>
    %c0_33 = arith.constant 0 : index
    %c0_34 = arith.constant 0 : index
    %37 = vector.load %arg3[%c0_33, %c0_34] : memref<128x100xf32, #tpu.memory_space<vmem>>, vector<128x100xf32>
    tpu.vector_store %arg3[%c0_33, %c0_34], %36 {strides = array<i32>} : memref<128x100xf32, #tpu.memory_space<vmem>>, vector<128x100xf32>,
    return
  }
  func.func @transform_0(%arg0: i32) -> (i32, i32) {
    %c0_i32 = arith.constant 0 : i32
    %c0_i32_0 = arith.constant 0 : i32
    return %arg0, %c0_i32 : i32, i32
  }
  func.func @transform_1(%arg0: i32) -> (i32, i32, i32) {
    %c0_i32 = arith.constant 0 : i32
    %c0_i32_0 = arith.constant 0 : i32
    %c0_i32_1 = arith.constant 0 : i32
    %c0_i32_2 = arith.constant 0 : i32
    return %c0_i32, %c0_i32_0, %c0_i32_1 : i32, i32, i32
  }
  func.func @transform_2(%arg0: i32) -> (i32, i32) {
    %c0_i32 = arith.constant 0 : i32
    %c0_i32_0 = arith.constant 0 : i32
    return %arg0, %c0_i32 : i32, i32
  }
}

</mosaic_0001>

<bundles_post_ra>
// kernel: split.4
= control target key start
LH: loop header
LB: loop body
LE: loop exit
PB: predicated region body
PF: predicated region fallthrough
CT: control target
= control target key end

     0   :  { %v174_v3 = vmov 0.0   ;;  %s360_s0 = inlined_call_operand.vmem [shape: f32[4,25,100], index: 0, kind: input, shape index: {}]   ;;  %s361_s1 = inlined_call_operand.vmem [shape: bf16[4,25,25], index: 1, kind: output, shape index: {}]  }
   0x1   :  { %v2_v0 = vld [vmem:[%s360_s0] sm:$0xf]  ;;  %v125_v1 = vld [vmem:[%s360_s0 + $0x4] sm:$0xf]  ;;  %v127_v2 = vld [vmem:[%s360_s0 + $0x8] sm:$0xf] }
   0x2   :  { %v3_v4 = vpack.c.bf16 %v174_v3, %v2_v0  ;;  %v8_v5 = vpack.c.bf16 %v174_v3, %v125_v1  ;;  %v13_v6 = vpack.c.bf16 %v174_v3, %v127_v2  ;;  %v129_v7 = vld [vmem:[%s360_s0 + $0xc] sm:$0xf]  ;;  %v131_v8 = vld [vmem:[%s360_s0 + $0x10] sm:$0xf]  ;;  %v133_v9 = vld [vmem:[%s360_s0 + $0x14] sm:$0xf] }
   0x3   :  { %v18_v10 = vpack.c.bf16 %v174_v3, %v129_v7  ;;  %v23_v11 = vpack.c.bf16 %v174_v3, %v131_v8  ;;  %v28_v12 = vpack.c.bf16 %v174_v3, %v133_v9  ;;  %v135_v13 = vld [vmem:[%s360_s0 + $0x18] sm:$0xf]  ;;  %v137_v14 = vld [vmem:[%s360_s0 + $0x1c] sm:$0xf]  ;;  %v139_v15 = vld [vmem:[%s360_s0 + $0x20] sm:$0xf] }
   0x4   :  { %4 = vst [vmem:[%s361_s1] sm:$0x3] %v3_v4  ;;  %126 = vst [vmem:[%s361_s1 + $0x2] sm:$0x3] %v8_v5  ;;  %v33_v16 = vpack.c.bf16 %v174_v3, %v135_v13  ;;  %v38_v17 = vpack.c.bf16 %v174_v3, %v137_v14  ;;  %v43_v18 = vpack.c.bf16 %v174_v3, %v139_v15  ;;  %v141_v19 = vld [vmem:[%s360_s0 + $0x24] sm:$0xf] }
   0x5   :  { %128 = vst [vmem:[%s361_s1 + $0x4] sm:$0x3] %v13_v6  ;;  %v143_v20 = vld [vmem:[%s360_s0 + $0x28] sm:$0xf]  ;;  %v145_v21 = vld [vmem:[%s360_s0 + $0x2c] sm:$0xf]  ;;  %v48_v22 = vpack.c.bf16 %v174_v3, %v141_v19 }
   0x6   :  { %130 = vst [vmem:[%s361_s1 + $0x6] sm:$0x3] %v18_v10  ;;  %132 = vst [vmem:[%s361_s1 + $0x8] sm:$0x3] %v23_v11  ;;  %v53_v23 = vpack.c.bf16 %v174_v3, %v143_v20  ;;  %v58_v24 = vpack.c.bf16 %v174_v3, %v145_v21  ;;  %v147_v25 = vld [vmem:[%s360_s0 + $0x30] sm:$0xf] }
   0x7   :  { %134 = vst [vmem:[%s361_s1 + $0xa] sm:$0x3] %v28_v12  ;;  %v149_v26 = vld [vmem:[%s360_s0 + $0x34] sm:$0xf]  ;;  %v151_v27 = vld [vmem:[%s360_s0 + $0x38] sm:$0xf]  ;;  %v63_v28 = vpack.c.bf16 %v174_v3, %v147_v25 }
   0x8   :  { %136 = vst [vmem:[%s361_s1 + $0xc] sm:$0x3] %v33_v16  ;;  %138 = vst [vmem:[%s361_s1 + $0xe] sm:$0x3] %v38_v17  ;;  %v68_v29 = vpack.c.bf16 %v174_v3, %v149_v26  ;;  %v73_v30 = vpack.c.bf16 %v174_v3, %v151_v27  ;;  %v153_v31 = vld [vmem:[%s360_s0 + $0x3c] sm:$0xf] }
   0x9   :  { %140 = vst [vmem:[%s361_s1 + $0x10] sm:$0x3] %v43_v18  ;;  %v155_v32 = vld [vmem:[%s360_s0 + $0x40] sm:$0xf]  ;;  %v157_v33 = vld [vmem:[%s360_s0 + $0x44] sm:$0xf]  ;;  %v78_v34 = vpack.c.bf16 %v174_v3, %v153_v31 }
   0xa   :  { %142 = vst [vmem:[%s361_s1 + $0x12] sm:$0x3] %v48_v22  ;;  %144 = vst [vmem:[%s361_s1 + $0x14] sm:$0x3] %v53_v23  ;;  %v83_v35 = vpack.c.bf16 %v174_v3, %v155_v32  ;;  %v88_v36 = vpack.c.bf16 %v174_v3, %v157_v33  ;;  %v159_v37 = vld [vmem:[%s360_s0 + $0x48] sm:$0xf] }
   0xb   :  { %146 = vst [vmem:[%s361_s1 + $0x16] sm:$0x3] %v58_v24  ;;  %v161_v38 = vld [vmem:[%s360_s0 + $0x4c] sm:$0xf]  ;;  %v163_v39 = vld [vmem:[%s360_s0 + $0x50] sm:$0xf]  ;;  %v93_v40 = vpack.c.bf16 %v174_v3, %v159_v37 }
   0xc   :  { %148 = vst [vmem:[%s361_s1 + $0x18] sm:$0x3] %v63_v28  ;;  %150 = vst [vmem:[%s361_s1 + $0x1a] sm:$0x3] %v68_v29  ;;  %v98_v41 = vpack.c.bf16 %v174_v3, %v161_v38  ;;  %v103_v42 = vpack.c.bf16 %v174_v3, %v163_v39  ;;  %v165_v43 = vld [vmem:[%s360_s0 + $0x54] sm:$0xf] }
   0xd   :  { %152 = vst [vmem:[%s361_s1 + $0x1c] sm:$0x3] %v73_v30  ;;  %v167_v44 = vld [vmem:[%s360_s0 + $0x58] sm:$0xf]  ;;  %v169_v45 = vld [vmem:[%s360_s0 + $0x5c] sm:$0xf]  ;;  %v108_v46 = vpack.c.bf16 %v174_v3, %v165_v43 }
   0xe   :  { %154 = vst [vmem:[%s361_s1 + $0x1e] sm:$0x3] %v78_v34  ;;  %156 = vst [vmem:[%s361_s1 + $0x20] sm:$0x3] %v83_v35  ;;  %v113_v47 = vpack.c.bf16 %v174_v3, %v167_v44  ;;  %v118_v48 = vpack.c.bf16 %v174_v3, %v169_v45  ;;  %v171_v49 = vld [vmem:[%s360_s0 + $0x60] sm:$0xf] }
   0xf   :  { %158 = vst [vmem:[%s361_s1 + $0x22] sm:$0x3] %v88_v36  ;;  %160 = vst [vmem:[%s361_s1 + $0x24] sm:$0x3] %v93_v40  ;;  %v123_v50 = vpack.c.bf16 %v174_v3, %v171_v49 }
  0x10   :  { %162 = vst [vmem:[%s361_s1 + $0x26] sm:$0x3] %v98_v41  ;;  %164 = vst [vmem:[%s361_s1 + $0x28] sm:$0x3] %v103_v42 }
  0x11   :  { %166 = vst [vmem:[%s361_s1 + $0x2a] sm:$0x3] %v108_v46  ;;  %168 = vst [vmem:[%s361_s1 + $0x2c] sm:$0x3] %v113_v47 }
  0x12   :  { %170 = vst [vmem:[%s361_s1 + $0x2e] sm:$0x3] %v118_v48  ;;  %172 = vst [vmem:[%s361_s1 + $0x30] sm:$0x3] %v123_v50 }

// kernel: transmlp_forward.1
= control target key start
LH: loop header
LB: loop body
LE: loop exit
PB: predicated region body
PF: predicated region fallthrough
CT: control target
= control target key end

     0   :  { %s1586_s9 = smov 0   ;;  %s2199_s0 = inlined_call_operand.vmem [shape: f32[256,100], index: 0, kind: input, shape index: {}]   ;;  %s2200_s1 = inlined_call_operand.vmem [shape: bf16[4,100,100], index: 1, kind: input, shape index: {}]   ;;  %s2201_s2 = inlined_call_operand.vmem [shape: f32[256,100], index: 2, kind: output, shape index: {}]  }
   0x1 LB: > { %s1233_s10 = sadd.s32 4294967295, %s1569_s9   ;;  %p1237_p0 = scmp.ge.s32.totalorder %s1569_s9, 1  ;;  %s1569_s9 = sphi %s1586_s9, %s12_s9  }
   0x2   : > { %p113_p1 = scmp.lt.s32.totalorder %s1569_s9, 3 }
   0x4   : > { %p114_p2 = pnand %p1237_p0, %p113_p1 }
   0x5   : > { %v1535_v0 = vld [vmem:[%s2200_s1] sm:$0xff] (!%p114_p2)   ;;  %v1536_v1 = vld [vmem:[%s2200_s1 + $0x8] sm:$0xff] (!%p114_p2)   ;;  %s1238_s15 = sshll.u32 (!%p114_p2), %s1233_s10, 4  ;;  %v1537_v2 = vld [vmem:[%s2200_s1 + $0x10] sm:$0xff] (!%p114_p2)   ;;  %vm164_vm0 = vcmask (!%p114_p2), 818176   ;;  %vm281_vm1 = vcmask (!%p114_p2), 1041408  }
   0x6   : > { %117 = sbr.rel (%p114_p2) target bundleno = 968 (0x3c8), region = 28  ;;  %1403 = vmatprep.subr.bf16.mxu0 (!%p114_p2), %v1535_v0  ;;  %p136_p3 = scmp.lt.s32.totalorder (!%p114_p2), %s1238_s15, 31  ;;  %v1538_v3 = vld [vmem:[%s2200_s1 + $0x18] sm:$0xff] (!%p114_p2)   ;;  %v1539_v11 = vld [vmem:[%s2200_s1 + $0x20] sm:$0xff] (!%p114_p2)   ;;  %v1540_v24 = vld [vmem:[%s2200_s1 + $0x28] sm:$0xff] (!%p114_p2)  }
   0x7   : > { %1404 = vmatpush3.bf16.msra.mxu0 (!%p114_p2), %v1535_v0  ;;  %v1542_v4 = vld [vmem:[%s2200_s1 + $0x34] sm:$0xff] (!%p114_p2)   ;;  %v1543_v22 = vld [vmem:[%s2200_s1 + $0x3c] sm:$0xff] (!%p114_p2)   ;;  %v1544_v23 = vld [vmem:[%s2200_s1 + $0x44] sm:$0xff] (!%p114_p2)  }
   0x8   : > { %1405 = vmatprep.subr.bf16.mxu0 (!%p114_p2), %v1536_v1  ;;  %1433 = vmatprep.subr.bf16.mxu1 (!%p114_p2), %v1542_v4  ;;  %v1541_v27 = vld [vmem:[%s2200_s1 + $0x30] ss:$0 sps:$4 sm:$0x33] (!%p114_p2)   ;;  %v1546_v52 = vld [vmem:[%s2200_s1 + $0x54] sm:$0xff] (!%p114_p2)   ;;  %v1547_v53 = vld [vmem:[%s2200_s1 + $0x5c] sm:$0xff] (!%p114_p2)  }
   0x9   : > { %1434 = vmatpush3.bf16.msra.mxu1 (!%p114_p2), %v1542_v4  ;;  %v283_v29 = vsel (!%p114_p2), %vm281_vm1, %v1541_v27, 0  ;;  %v1545_v51 = vld [vmem:[%s2200_s1 + $0x4c] sm:$0xff] (!%p114_p2)   ;;  %v1548_v54 = vld [vmem:[%s2200_s1 + $0x64] ss:$0 sps:$4 sm:$0x33] (!%p114_p2)   ;;  %v1551_v58 = vld [vmem:[%s2200_s1 + $0x78] sm:$0xff] (!%p114_p2)  }
   0xa   : > { %1435 = vmatprep.subr.bf16.mxu1 (!%p114_p2), %v1543_v22  ;;  %v532_v55 = vsel (!%p114_p2), %vm281_vm1, %v1548_v54, 0  ;;  %v1549_v56 = vld [vmem:[%s2200_s1 + $0x68] sm:$0xff] (!%p114_p2)   ;;  %v1550_v57 = vld [vmem:[%s2200_s1 + $0x70] sm:$0xff] (!%p114_p2)  }
   0xb   : > { %1406 = vmatpush3.bf16.msra.mxu0 (!%p114_p2), %v1536_v1 }
   0xc   : > { %1407 = vmatprep.subr.bf16.mxu0 (!%p114_p2), %v1537_v2 }
   0xd   : > { %s2203_s15 = smov (!%p136_p3, %s1238_s15), 31  ;;  %1436 = vmatpush3.bf16.msra.mxu1 %v1543_v22 }
   0xe   : > { %s1239_s20 = sshll.u32 %s2203_s15, 3  ;;  %1437 = vmatprep.subr.bf16.mxu1 %v1544_v23 }
   0xf   : > { %s1609_s23 = scalar_lea.vmem %s2199_s0, %s1239_s20  ;;  %s1614_s26 = scalar_lea.vmem %s2201_s2, %s1239_s20  ;;  %1408 = vmatpush3.bf16.msra.mxu0 %v1537_v2 }
  0x10   : > { %v148_v5 = vld [vmem:[%s1609_s23] sm:$0xff]  ;;  %v149_v6 = vld [vmem:[%s1609_s23 + $0x8] sm:$0xff]  ;;  %v150_v7 = vld [vmem:[%s1609_s23 + $0x10] sm:$0xff]  ;;  %1409 = vmatprep.subr.bf16.mxu0 %v1538_v3 }
  0x11   : > { %165 = vst.msk [vmem:[%s1614_s26] sm:$0xff] %vm164_vm0, %v148_v5  ;;  %166 = vst.msk [vmem:[%s1614_s26 + $0x8] sm:$0xff] %vm164_vm0, %v149_v6  ;;  %v151_v8 = vld [vmem:[%s1609_s23 + $0x18] sm:$0xff]  ;;  %v152_v9 = vld [vmem:[%s1609_s23 + $0x20] sm:$0xff]  ;;  %1438 = vmatpush3.bf16.msra.mxu1 %v1544_v23 }
  0x12   : > { %167 = vst.msk [vmem:[%s1614_s26 + $0x10] sm:$0xff] %vm164_vm0, %v150_v7  ;;  %v153_v10 = vld [vmem:[%s1609_s23 + $0x28] sm:$0xff]  ;;  %168 = vst.msk [vmem:[%s1614_s26 + $0x18] sm:$0xff] %vm164_vm0, %v151_v8  ;;  %v154_v12 = vld [vmem:[%s1609_s23 + $0x30] sm:$0xff]  ;;  %1439 = vmatprep.subr.bf16.mxu1 %v1545_v51 }
  0x13   : > { %169 = vst.msk [vmem:[%s1614_s26 + $0x20] sm:$0xff] %vm164_vm0, %v152_v9  ;;  %170 = vst.msk [vmem:[%s1614_s26 + $0x28] sm:$0xff] %vm164_vm0, %v153_v10  ;;  %v155_v13 = vld [vmem:[%s1609_s23 + $0x38] sm:$0xff]  ;;  %v156_v14 = vld [vmem:[%s1609_s23 + $0x40] sm:$0xff]  ;;  %1410 = vmatpush3.bf16.msra.mxu0 %v1538_v3 }
  0x14   : > { %171 = vst.msk [vmem:[%s1614_s26 + $0x30] sm:$0xff] %vm164_vm0, %v154_v12  ;;  %172 = vst.msk [vmem:[%s1614_s26 + $0x38] sm:$0xff] %vm164_vm0, %v155_v13  ;;  %v157_v15 = vld [vmem:[%s1609_s23 + $0x48] sm:$0xff]  ;;  %v158_v16 = vld [vmem:[%s1609_s23 + $0x50] sm:$0xff]  ;;  %1411 = vmatprep.subr.bf16.mxu0 %v1539_v11 }
  0x15   : > { %173 = vst.msk [vmem:[%s1614_s26 + $0x40] sm:$0xff] %vm164_vm0, %v156_v14  ;;  %v159_v17 = vld [vmem:[%s1609_s23 + $0x58] sm:$0xff]  ;;  %174 = vst.msk [vmem:[%s1614_s26 + $0x48] sm:$0xff] %vm164_vm0, %v157_v15  ;;  %v160_v18 = vld [vmem:[%s1609_s23 + $0x60] sm:$0xff]  ;;  %1440 = vmatpush3.bf16.msra.mxu1 %v1545_v51 }
  0x16   : > { %175 = vst.msk [vmem:[%s1614_s26 + $0x50] sm:$0xff] %vm164_vm0, %v158_v16  ;;  %176 = vst.msk [vmem:[%s1614_s26 + $0x58] sm:$0xff] %vm164_vm0, %v159_v17  ;;  %v161_v19 = vld [vmem:[%s1609_s23 + $0x68] sm:$0xff]  ;;  %v162_v20 = vld [vmem:[%s1609_s23 + $0x70] sm:$0xff]  ;;  %1441 = vmatprep.subr.bf16.mxu1 %v1546_v52 }
  0x17   : > { %177 = vst.msk [vmem:[%s1614_s26 + $0x60] sm:$0xff] %vm164_vm0, %v160_v18  ;;  %178 = vst.msk [vmem:[%s1614_s26 + $0x68] sm:$0xff] %vm164_vm0, %v161_v19  ;;  %v163_v21 = vld [vmem:[%s1609_s23 + $0x78] sm:$0xff]  ;;  %1412 = vmatpush3.bf16.msra.mxu0 %v1539_v11 }
  0x18   : > { %179 = vst.msk [vmem:[%s1614_s26 + $0x70] sm:$0xff] %vm164_vm0, %v162_v20  ;;  %180 = vst.msk [vmem:[%s1614_s26 + $0x78] sm:$0xff] %vm164_vm0, %v163_v21  ;;  %v1680_v25 = vld [vmem:[%s1614_s26] sm:$0xff]  ;;  %v1683_v26 = vld [vmem:[%s1614_s26 + $0x8] sm:$0xff]  ;;  %1413 = vmatprep.subr.bf16.mxu0 %v1540_v24 }
  0x19   : > { %v197_v28 = vpack.c.bf16 %v1683_v26, %v1680_v25  ;;  %v183_v30 = vld [vmem:[%s1614_s26 + $0x10] sm:$0xff]  ;;  %v1694_v31 = vld [vmem:[%s1614_s26 + $0x18] sm:$0xff]  ;;  %1442 = vmatpush3.bf16.msra.mxu1 %v1546_v52 }
  0x1a   : > { %v1697_v32 = vld [vmem:[%s1614_s26 + $0x20] sm:$0xff]  ;;  %v1700_v33 = vld [vmem:[%s1614_s26 + $0x28] sm:$0xff]  ;;  %v198_v34 = vpack.c.bf16 %v1694_v31, %v183_v30  ;;  %1443 = vmatprep.subr.bf16.mxu1 %v1547_v53 }
  0x1b   : > { %1417 = vmatprep.mubr.msk.bf16.mxu0 %vm164_vm0, %v197_v28  ;;  %1414 = vmatpush3.bf16.msra.mxu0 %v1540_v24  ;;  %v199_v35 = vpack.c.bf16 %v1700_v33, %v1697_v32  ;;  %v1707_v36 = vld [vmem:[%s1614_s26 + $0x30] sm:$0xff]  ;;  %v1712_v37 = vld [vmem:[%s1614_s26 + $0x38] sm:$0xff] }
  0x1c   : > { %1523 = vmatprep.subr.msk.bf16.mxu0 %vm281_vm1, %v1541_v27  ;;  %v1715_v38 = vld [vmem:[%s1614_s26 + $0x40] sm:$0xff]  ;;  %v1718_v39 = vld [vmem:[%s1614_s26 + $0x48] sm:$0xff]  ;;  %v200_v40 = vpack.c.bf16 %v1712_v37, %v1707_v36 }
  0x1d   : > { %v201_v41 = vpack.c.bf16 %v1718_v39, %v1715_v38  ;;  %v1727_v42 = vld [vmem:[%s1614_s26 + $0x50] sm:$0xff]  ;;  %v1730_v43 = vld [vmem:[%s1614_s26 + $0x58] sm:$0xff]  ;;  %1444 = vmatpush3.bf16.msra.mxu1 %v1547_v53 }
  0x1e   : > { %v1733_v44 = vld [vmem:[%s1614_s26 + $0x60] sm:$0xff]  ;;  %v1736_v45 = vld [vmem:[%s1614_s26 + $0x68] sm:$0xff]  ;;  %v202_v46 = vpack.c.bf16 %v1730_v43, %v1727_v42  ;;  %1524 = vmatprep.subr.msk.bf16.mxu1 %vm281_vm1, %v1548_v54 }
  0x1f   : > { %1416 = vmatpush3.bf16.msra.mxu0 %v283_v29  ;;  %v203_v47 = vpack.c.bf16 %v1736_v45, %v1733_v44  ;;  %v1745_v48 = vld [vmem:[%s1614_s26 + $0x70] sm:$0xff]  ;;  %v1748_v49 = vld [vmem:[%s1614_s26 + $0x78] sm:$0xff] }
  0x20   : > { %v204_v50 = vpack.c.bf16 %v1748_v49, %v1745_v48  ;;  %1463 = vmatprep.subr.bf16.mxu0 %v1549_v56 }
  0x21   : > { %1446 = vmatpush3.bf16.msra.mxu1 %v532_v55 }
  0x22   : > { %1418 = vmatmul.mubr.msk.bf16.vlgmr.msra.gmra.mrb[0].mxu0 %vm164_vm0, %v198_v34 }
  0x23   : > { %1421 = vmatprep.mubr.msk.bf16.mxu0 %vm164_vm0, %v199_v35  ;;  %1464 = vmatpush3.bf16.msra.mxu0 %v1549_v56 }
  0x24   : > { %1465 = vmatprep.subr.bf16.mxu0 %v1550_v57 }
  0x27   : > { %1466 = vmatpush3.bf16.msra.mxu0 %v1550_v57 }
  0x28   : > { %1467 = vmatprep.subr.bf16.mxu0 %v1551_v58 }
  0x2a   : > { %1422 = vmatmul.mubr.msk.bf16.gmra.mrb[4].mxu0 %vm164_vm0, %v200_v40 }
  0x2b   : > { %1425 = vmatprep.mubr.msk.bf16.mxu0 %vm164_vm0, %v201_v41  ;;  %1468 = vmatpush3.bf16.msra.mxu0 %v1551_v58 }
  0x32   : > { %1426 = vmatmul.mubr.msk.bf16.gmra.mrb[8].mxu0 %vm164_vm0, %v202_v46 }
  0x33   : > { %1429 = vmatprep.mubr.msk.bf16.mxu0 %vm164_vm0, %v203_v47 }
  0x3a   : > { %1430 = vmatmul.mubr.msk.bf16.gmra.mrb[12].mxu0 %vm164_vm0, %v204_v50 }
  0xf5   : > { %v1419_v59 = vpop.f32.mrb[0].mxu0 }
  0xf6   : > { %v384_v60 = vmax.f32 %v1419_v59, 0.0  ;;  %v319_v61 = vpop.f32.mrb[1].mxu0 }
  0xf7   : > { %v382_v62 = vmax.f32 %v319_v61, 0.0  ;;  %v1420_v63 = vpop.f32.mrb[2].mxu0 }
  0xf8   : > { %v400_v0 = vadd.f32 %v384_v60, %v183_v30  ;;  %v385_v1 = vmax.f32 %v1420_v63, 0.0  ;;  %v322_v2 = vpop.f32.mrb[3].mxu0 }
  0xf9   : > { %v398_v3 = vadd.f32 %v382_v62, %v1680_v25  ;;  %v383_v4 = vmax.f32 %v322_v2, 0.0 }
  0xfa   : > { %416 = vst.msk [vmem:[%s1614_s26 + $0x10] sm:$0xff] %vm164_vm0, %v400_v0  ;;  %v401_v5 = vadd.f32 %v385_v1, %v1694_v31 }
  0xfb   : > { %414 = vst.msk [vmem:[%s1614_s26] sm:$0xff] %vm164_vm0, %v398_v3  ;;  %v399_v6 = vadd.f32 %v383_v4, %v1683_v26  ;;  %v1552_v3 = vld [vmem:[%s2200_s1 + $0x80] sm:$0xff]   ;;  %v1553_v4 = vld [vmem:[%s2200_s1 + $0x88] sm:$0xff]  }
  0xfc   : > { %417 = vst.msk [vmem:[%s1614_s26 + $0x18] sm:$0xff] %vm164_vm0, %v401_v5  ;;  %1469 = vmatprep.subr.bf16.mxu0 %v1552_v3  ;;  %v1554_v5 = vld [vmem:[%s2200_s1 + $0x90] sm:$0xff]  }
  0xfd   : > { %415 = vst.msk [vmem:[%s1614_s26 + $0x8] sm:$0xff] %vm164_vm0, %v399_v6  ;;  %v1423_v7 = vpop.f32.mrb[4].mxu0  ;;  %1470 = vmatpush3.bf16.msra.mxu0 %v1552_v3  ;;  %v1555_v6 = vld [vmem:[%s2200_s1 + $0x98] ss:$0 sps:$4 sm:$0x33]  }
  0xfe   : > { %v388_v8 = vmax.f32 %v1423_v7, 0.0  ;;  %v335_v9 = vpop.f32.mrb[5].mxu0  ;;  %1471 = vmatprep.subr.bf16.mxu0 %v1553_v4  ;;  %v781_v7 = vsel %vm281_vm1, %v1555_v6, 0 }
  0xff   : > { %v386_v10 = vmax.f32 %v335_v9, 0.0  ;;  %v1424_v11 = vpop.f32.mrb[6].mxu0  ;;  %v1557_v9 = vld [vmem:[%s2200_s1 + $0xa4] sm:$0xff]  }
 0x100   : > { %v404_v12 = vadd.f32 %v388_v8, %v1707_v36  ;;  %v389_v13 = vmax.f32 %v1424_v11, 0.0  ;;  %v338_v14 = vpop.f32.mrb[7].mxu0  ;;  %v1556_v8 = vld [vmem:[%s2200_s1 + $0x9c] sm:$0xff]  }
 0x101   : > { %v402_v15 = vadd.f32 %v386_v10, %v1697_v32  ;;  %v387_v16 = vmax.f32 %v338_v14, 0.0  ;;  %v1811_v24 = vld [vmem:[%s1614_s26 + $0x10] sm:$0xff]  ;;  %1472 = vmatpush3.bf16.msra.mxu0 %v1553_v4  ;;  %1493 = vmatprep.subr.bf16.mxu1 %v1556_v8 }
 0x102   : > { %420 = vst.msk [vmem:[%s1614_s26 + $0x30] sm:$0xff] %vm164_vm0, %v404_v12  ;;  %v405_v17 = vadd.f32 %v389_v13, %v1712_v37  ;;  %v1801_v20 = vld [vmem:[%s1614_s26] sm:$0xff]  ;;  %1473 = vmatprep.subr.bf16.mxu0 %v1554_v5  ;;  %v1558_v10 = vld [vmem:[%s2200_s1 + $0xac] sm:$0xff]  }
 0x103   : > { %418 = vst.msk [vmem:[%s1614_s26 + $0x20] sm:$0xff] %vm164_vm0, %v402_v15  ;;  %v403_v18 = vadd.f32 %v387_v16, %v1700_v33  ;;  %v1796_v19 = vld [vmem:[%s1614_s26 + $0x18] sm:$0xff] }
 0x104   : > { %421 = vst.msk [vmem:[%s1614_s26 + $0x38] sm:$0xff] %vm164_vm0, %v405_v17  ;;  %v1804_v21 = vld [vmem:[%s1614_s26 + $0x8] sm:$0xff]  ;;  %v447_v27 = vpack.c.bf16 %v1796_v19, %v1811_v24 }
 0x105   : > { %419 = vst.msk [vmem:[%s1614_s26 + $0x28] sm:$0xff] %vm164_vm0, %v403_v18  ;;  %v1427_v22 = vpop.f32.mrb[8].mxu0  ;;  %v446_v23 = vpack.c.bf16 %v1804_v21, %v1801_v20  ;;  %1474 = vmatpush3.bf16.msra.mxu0 %v1554_v5 }
 0x106   : > { %v392_v25 = vmax.f32 %v1427_v22, 0.0  ;;  %v351_v26 = vpop.f32.mrb[9].mxu0  ;;  %1525 = vmatprep.subr.msk.bf16.mxu0 %vm281_vm1, %v1555_v6 }
 0x107   : > { %v390_v28 = vmax.f32 %v351_v26, 0.0  ;;  %v1428_v29 = vpop.f32.mrb[10].mxu0  ;;  %1447 = vmatprep.mubr.msk.bf16.mxu1 %vm164_vm0, %v446_v23 }
 0x108   : > { %v408_v30 = vadd.f32 %v392_v25, %v1727_v42  ;;  %v393_v31 = vmax.f32 %v1428_v29, 0.0  ;;  %v354_v32 = vpop.f32.mrb[11].mxu0  ;;  %1448 = vmatmul.mubr.msk.bf16.vlgmr.msra.gmra.mrb[0].mxu1 %vm164_vm0, %v447_v27 }
 0x109   : > { %v406_v33 = vadd.f32 %v390_v28, %v1715_v38  ;;  %v391_v34 = vmax.f32 %v354_v32, 0.0  ;;  %1476 = vmatpush3.bf16.msra.mxu0 %v781_v7  ;;  %1494 = vmatpush3.bf16.msra.mxu1 %v1556_v8 }
 0x10a   : > { %424 = vst.msk [vmem:[%s1614_s26 + $0x50] sm:$0xff] %vm164_vm0, %v408_v30  ;;  %v409_v35 = vadd.f32 %v393_v31, %v1730_v43  ;;  %v1831_v40 = vld [vmem:[%s1614_s26 + $0x20] sm:$0xff]  ;;  %v1841_v43 = vld [vmem:[%s1614_s26 + $0x30] sm:$0xff]  ;;  %1495 = vmatprep.subr.bf16.mxu1 %v1557_v9 }
 0x10b   : > { %422 = vst.msk [vmem:[%s1614_s26 + $0x40] sm:$0xff] %vm164_vm0, %v406_v33  ;;  %v407_v36 = vadd.f32 %v391_v34, %v1718_v39  ;;  %v1826_v37 = vld [vmem:[%s1614_s26 + $0x38] sm:$0xff] }
 0x10c   : > { %425 = vst.msk [vmem:[%s1614_s26 + $0x58] sm:$0xff] %vm164_vm0, %v409_v35  ;;  %v1834_v41 = vld [vmem:[%s1614_s26 + $0x28] sm:$0xff]  ;;  %v449_v47 = vpack.c.bf16 %v1826_v37, %v1841_v43 }
 0x10d   : > { %423 = vst.msk [vmem:[%s1614_s26 + $0x48] sm:$0xff] %vm164_vm0, %v407_v36  ;;  %v1431_v38 = vpop.f32.mrb[12].mxu0  ;;  %v448_v42 = vpack.c.bf16 %v1834_v41, %v1831_v40  ;;  %1496 = vmatpush3.bf16.msra.mxu1 %v1557_v9 }
 0x10e   : > { %v396_v46 = vmax.f32 %v1431_v38, 0.0  ;;  %v367_v39 = vpop.f32.mrb[13].mxu0  ;;  %1497 = vmatprep.subr.bf16.mxu1 %v1558_v10 }
 0x10f   : > { %v394_v50 = vmax.f32 %v367_v39, 0.0  ;;  %v1432_v51 = vpop.f32.mrb[14].mxu0  ;;  %1451 = vmatprep.mubr.msk.bf16.mxu1 %vm164_vm0, %v448_v42 }
 0x110   : > { %v412_v52 = vadd.f32 %v396_v46, %v1745_v48  ;;  %v397_v53 = vmax.f32 %v1432_v51, 0.0  ;;  %v370_v54 = vpop.f32.mrb[15].mxu0  ;;  %1452 = vmatmul.mubr.msk.bf16.gmra.mrb[4].mxu1 %vm164_vm0, %v449_v47 }
 0x111   : > { %v410_v55 = vadd.f32 %v394_v50, %v1733_v44  ;;  %v395_v56 = vmax.f32 %v370_v54, 0.0  ;;  %v1871_v61 = vld [vmem:[%s1614_s26 + $0x50] sm:$0xff]  ;;  %1498 = vmatpush3.bf16.msra.mxu1 %v1558_v10 }
 0x112   : > { %428 = vst.msk [vmem:[%s1614_s26 + $0x70] sm:$0xff] %vm164_vm0, %v412_v52  ;;  %v413_v57 = vadd.f32 %v397_v53, %v1748_v49  ;;  %v1861_v59 = vld [vmem:[%s1614_s26 + $0x40] sm:$0xff] }
 0x113   : > { %426 = vst.msk [vmem:[%s1614_s26 + $0x60] sm:$0xff] %vm164_vm0, %v410_v55  ;;  %v411_v48 = vadd.f32 %v395_v56, %v1736_v45  ;;  %v1856_v58 = vld [vmem:[%s1614_s26 + $0x58] sm:$0xff] }
 0x114   : > { %429 = vst.msk [vmem:[%s1614_s26 + $0x78] sm:$0xff] %vm164_vm0, %v413_v57  ;;  %v1864_v44 = vld [vmem:[%s1614_s26 + $0x48] sm:$0xff]  ;;  %v451_v49 = vpack.c.bf16 %v1856_v58, %v1871_v61 }
 0x115   : > { %427 = vst.msk [vmem:[%s1614_s26 + $0x68] sm:$0xff] %vm164_vm0, %v411_v48  ;;  %v450_v60 = vpack.c.bf16 %v1864_v44, %v1861_v59 }
 0x117   : > { %1455 = vmatprep.mubr.msk.bf16.mxu1 %vm164_vm0, %v450_v60 }
 0x118   : > { %1456 = vmatmul.mubr.msk.bf16.gmra.mrb[8].mxu1 %vm164_vm0, %v451_v49 }
 0x119   : > { %v1889_v1 = vld [vmem:[%s1614_s26 + $0x70] sm:$0xff] }
 0x11a   : > { %v1881_v62 = vld [vmem:[%s1614_s26 + $0x60] sm:$0xff] }
 0x11b   : > { %v1878_v45 = vld [vmem:[%s1614_s26 + $0x78] sm:$0xff] }
 0x11c   : > { %v1884_v63 = vld [vmem:[%s1614_s26 + $0x68] sm:$0xff]  ;;  %v453_v2 = vpack.c.bf16 %v1878_v45, %v1889_v1 }
 0x11d   : > { %v452_v0 = vpack.c.bf16 %v1884_v63, %v1881_v62 }
 0x11f   : > { %1459 = vmatprep.mubr.msk.bf16.mxu1 %vm164_vm0, %v452_v0 }
 0x120   : > { %1460 = vmatmul.mubr.msk.bf16.gmra.mrb[12].mxu1 %vm164_vm0, %v453_v2 }
 0x1db   : > { %v1449_v11 = vpop.f32.mrb[0].mxu1 }
 0x1dc   : > { %v633_v12 = vmax.f32 %v1449_v11, 0.0  ;;  %v568_v13 = vpop.f32.mrb[1].mxu1 }
 0x1dd   : > { %v631_v14 = vmax.f32 %v568_v13, 0.0  ;;  %v1450_v15 = vpop.f32.mrb[2].mxu1 }
 0x1de   : > { %v649_v16 = vadd.f32 %v633_v12, %v1811_v24  ;;  %v634_v17 = vmax.f32 %v1450_v15, 0.0  ;;  %v571_v18 = vpop.f32.mrb[3].mxu1 }
 0x1df   : > { %v647_v22 = vadd.f32 %v631_v14, %v1801_v20  ;;  %v632_v23 = vmax.f32 %v571_v18, 0.0 }
 0x1e0   : > { %665 = vst.msk [vmem:[%s1614_s26 + $0x10] sm:$0xff] %vm164_vm0, %v649_v16  ;;  %v650_v25 = vadd.f32 %v634_v17, %v1796_v19 }
 0x1e1   : > { %663 = vst.msk [vmem:[%s1614_s26] sm:$0xff] %vm164_vm0, %v647_v22  ;;  %v648_v26 = vadd.f32 %v632_v23, %v1804_v21  ;;  %v1559_v22 = vld [vmem:[%s2200_s1 + $0xb4] sm:$0xff]   ;;  %v1560_v23 = vld [vmem:[%s2200_s1 + $0xbc] sm:$0xff]  }
 0x1e2   : > { %666 = vst.msk [vmem:[%s1614_s26 + $0x18] sm:$0xff] %vm164_vm0, %v650_v25  ;;  %1499 = vmatprep.subr.bf16.mxu1 %v1559_v22  ;;  %v1561_v25 = vld [vmem:[%s2200_s1 + $0xc4] sm:$0xff]  }
 0x1e3   : > { %664 = vst.msk [vmem:[%s1614_s26 + $0x8] sm:$0xff] %vm164_vm0, %v648_v26  ;;  %v1453_v24 = vpop.f32.mrb[4].mxu1  ;;  %1500 = vmatpush3.bf16.msra.mxu1 %v1559_v22  ;;  %v1562_v26 = vld [vmem:[%s2200_s1 + $0xcc] ss:$0 sps:$4 sm:$0x33]  }
 0x1e4   : > { %v637_v20 = vmax.f32 %v1453_v24, 0.0  ;;  %v584_v27 = vpop.f32.mrb[5].mxu1  ;;  %1501 = vmatprep.subr.bf16.mxu1 %v1560_v23  ;;  %v1030_v24 = vsel %vm281_vm1, %v1562_v26, 0 }
 0x1e5   : > { %v635_v28 = vmax.f32 %v584_v27, 0.0  ;;  %v1454_v29 = vpop.f32.mrb[6].mxu1 }
 0x1e6   : > { %v653_v19 = vadd.f32 %v637_v20, %v1841_v43  ;;  %v638_v30 = vmax.f32 %v1454_v29, 0.0  ;;  %v587_v31 = vpop.f32.mrb[7].mxu1 }
 0x1e7   : > { %v651_v21 = vadd.f32 %v635_v28, %v1831_v40  ;;  %v636_v32 = vmax.f32 %v587_v31, 0.0  ;;  %1502 = vmatpush3.bf16.msra.mxu1 %v1560_v23 }
 0x1e8   : > { %669 = vst.msk [vmem:[%s1614_s26 + $0x30] sm:$0xff] %vm164_vm0, %v653_v19  ;;  %v654_v33 = vadd.f32 %v638_v30, %v1826_v37  ;;  %v1944_v36 = vld [vmem:[%s1614_s26] sm:$0xff]  ;;  %v1954_v37 = vld [vmem:[%s1614_s26 + $0x10] sm:$0xff]  ;;  %1503 = vmatprep.subr.bf16.mxu1 %v1561_v25 }
 0x1e9   : > { %667 = vst.msk [vmem:[%s1614_s26 + $0x20] sm:$0xff] %vm164_vm0, %v651_v21  ;;  %v652_v34 = vadd.f32 %v636_v32, %v1834_v41  ;;  %v1939_v35 = vld [vmem:[%s1614_s26 + $0x18] sm:$0xff] }
 0x1ea   : > { %670 = vst.msk [vmem:[%s1614_s26 + $0x38] sm:$0xff] %vm164_vm0, %v654_v33  ;;  %v1947_v38 = vld [vmem:[%s1614_s26 + $0x8] sm:$0xff]  ;;  %v696_v46 = vpack.c.bf16 %v1939_v35, %v1954_v37 }
 0x1eb   : > { %668 = vst.msk [vmem:[%s1614_s26 + $0x28] sm:$0xff] %vm164_vm0, %v652_v34  ;;  %v1457_v40 = vpop.f32.mrb[8].mxu1  ;;  %v695_v42 = vpack.c.bf16 %v1947_v38, %v1944_v36  ;;  %1504 = vmatpush3.bf16.msra.mxu1 %v1561_v25 }
 0x1ec   : > { %v641_v43 = vmax.f32 %v1457_v40, 0.0  ;;  %v600_v41 = vpop.f32.mrb[9].mxu1  ;;  %1526 = vmatprep.subr.msk.bf16.mxu1 %vm281_vm1, %v1562_v26 }
 0x1ed   : > { %v639_v39 = vmax.f32 %v600_v41, 0.0  ;;  %v1458_v47 = vpop.f32.mrb[10].mxu1  ;;  %1477 = vmatprep.mubr.msk.bf16.mxu0 %vm164_vm0, %v695_v42 }
 0x1ee   : > { %v657_v50 = vadd.f32 %v641_v43, %v1871_v61  ;;  %v642_v51 = vmax.f32 %v1458_v47, 0.0  ;;  %v603_v52 = vpop.f32.mrb[11].mxu1  ;;  %1478 = vmatmul.mubr.msk.bf16.vlgmr.msra.gmra.mrb[16].mxu0 %vm164_vm0, %v696_v46 }
 0x1ef   : > { %v655_v53 = vadd.f32 %v639_v39, %v1861_v59  ;;  %v640_v54 = vmax.f32 %v603_v52, 0.0  ;;  %1506 = vmatpush3.bf16.msra.mxu1 %v1030_v24 }
 0x1f0   : > { %673 = vst.msk [vmem:[%s1614_s26 + $0x50] sm:$0xff] %vm164_vm0, %v657_v50  ;;  %v658_v55 = vadd.f32 %v642_v51, %v1856_v58  ;;  %v1974_v48 = vld [vmem:[%s1614_s26 + $0x20] sm:$0xff]  ;;  %v1984_v58 = vld [vmem:[%s1614_s26 + $0x30] sm:$0xff] }
 0x1f1   : > { %671 = vst.msk [vmem:[%s1614_s26 + $0x40] sm:$0xff] %vm164_vm0, %v655_v53  ;;  %v656_v56 = vadd.f32 %v640_v54, %v1864_v44  ;;  %v1969_v57 = vld [vmem:[%s1614_s26 + $0x38] sm:$0xff] }
 0x1f2   : > { %674 = vst.msk [vmem:[%s1614_s26 + $0x58] sm:$0xff] %vm164_vm0, %v658_v55  ;;  %v1977_v60 = vld [vmem:[%s1614_s26 + $0x28] sm:$0xff]  ;;  %v698_v0 = vpack.c.bf16 %v1969_v57, %v1984_v58 }
 0x1f3   : > { %672 = vst.msk [vmem:[%s1614_s26 + $0x48] sm:$0xff] %vm164_vm0, %v656_v56  ;;  %v1461_v59 = vpop.f32.mrb[12].mxu1  ;;  %v697_v61 = vpack.c.bf16 %v1977_v60, %v1974_v48 }
 0x1f4   : > { %v645_v49 = vmax.f32 %v1461_v59, 0.0  ;;  %v616_v44 = vpop.f32.mrb[13].mxu1 }
 0x1f5   : > { %v643_v2 = vmax.f32 %v616_v44, 0.0  ;;  %v1462_v3 = vpop.f32.mrb[14].mxu1  ;;  %1481 = vmatprep.mubr.msk.bf16.mxu0 %vm164_vm0, %v697_v61 }
 0x1f6   : > { %v661_v4 = vadd.f32 %v645_v49, %v1889_v1  ;;  %v646_v5 = vmax.f32 %v1462_v3, 0.0  ;;  %v619_v6 = vpop.f32.mrb[15].mxu1  ;;  %1482 = vmatmul.mubr.msk.bf16.gmra.mrb[20].mxu0 %vm164_vm0, %v698_v0 }
 0x1f7   : > { %v659_v7 = vadd.f32 %v643_v2, %v1881_v62  ;;  %v644_v8 = vmax.f32 %v619_v6, 0.0  ;;  %v2014_v13 = vld [vmem:[%s1614_s26 + $0x50] sm:$0xff] }
 0x1f8   : > { %677 = vst.msk [vmem:[%s1614_s26 + $0x70] sm:$0xff] %vm164_vm0, %v661_v4  ;;  %v662_v9 = vadd.f32 %v646_v5, %v1878_v45  ;;  %v2004_v11 = vld [vmem:[%s1614_s26 + $0x40] sm:$0xff] }
 0x1f9   : > { %675 = vst.msk [vmem:[%s1614_s26 + $0x60] sm:$0xff] %vm164_vm0, %v659_v7  ;;  %v660_v1 = vadd.f32 %v644_v8, %v1884_v63  ;;  %v1999_v10 = vld [vmem:[%s1614_s26 + $0x58] sm:$0xff] }
 0x1fa   : > { %678 = vst.msk [vmem:[%s1614_s26 + $0x78] sm:$0xff] %vm164_vm0, %v662_v9  ;;  %v2007_v62 = vld [vmem:[%s1614_s26 + $0x48] sm:$0xff]  ;;  %v700_v45 = vpack.c.bf16 %v1999_v10, %v2014_v13 }
 0x1fb   : > { %676 = vst.msk [vmem:[%s1614_s26 + $0x68] sm:$0xff] %vm164_vm0, %v660_v1  ;;  %v699_v12 = vpack.c.bf16 %v2007_v62, %v2004_v11 }
 0x1fd   : > { %1485 = vmatprep.mubr.msk.bf16.mxu0 %vm164_vm0, %v699_v12 }
 0x1fe   : > { %1486 = vmatmul.mubr.msk.bf16.gmra.mrb[24].mxu0 %vm164_vm0, %v700_v45 }
 0x1ff   : > { %v2032_v17 = vld [vmem:[%s1614_s26 + $0x70] sm:$0xff] }
 0x200   : > { %v2024_v14 = vld [vmem:[%s1614_s26 + $0x60] sm:$0xff] }
 0x201   : > { %v2021_v63 = vld [vmem:[%s1614_s26 + $0x78] sm:$0xff] }
 0x202   : > { %v2027_v15 = vld [vmem:[%s1614_s26 + $0x68] sm:$0xff]  ;;  %v702_v18 = vpack.c.bf16 %v2021_v63, %v2032_v17 }
 0x203   : > { %v701_v16 = vpack.c.bf16 %v2027_v15, %v2024_v14 }
 0x205   : > { %1489 = vmatprep.mubr.msk.bf16.mxu0 %vm164_vm0, %v701_v16 }
 0x206   : > { %1490 = vmatmul.mubr.msk.bf16.gmra.mrb[28].mxu0 %vm164_vm0, %v702_v18 }
 0x2c1   : > { %v1479_v20 = vpop.f32.mrb[16].mxu0 }
 0x2c2   : > { %v882_v27 = vmax.f32 %v1479_v20, 0.0  ;;  %v817_v28 = vpop.f32.mrb[17].mxu0 }
 0x2c3   : > { %v880_v29 = vmax.f32 %v817_v28, 0.0  ;;  %v1480_v19 = vpop.f32.mrb[18].mxu0 }
 0x2c4   : > { %v898_v30 = vadd.f32 %v882_v27, %v1954_v37  ;;  %v883_v31 = vmax.f32 %v1480_v19, 0.0  ;;  %v820_v21 = vpop.f32.mrb[19].mxu0 }
 0x2c5   : > { %v896_v32 = vadd.f32 %v880_v29, %v1944_v36  ;;  %v881_v33 = vmax.f32 %v820_v21, 0.0 }
 0x2c6   : > { %914 = vst.msk [vmem:[%s1614_s26 + $0x10] sm:$0xff] %vm164_vm0, %v898_v30  ;;  %v899_v34 = vadd.f32 %v883_v31, %v1939_v35 }
 0x2c7   : > { %912 = vst.msk [vmem:[%s1614_s26] sm:$0xff] %vm164_vm0, %v896_v32  ;;  %v897_v40 = vadd.f32 %v881_v33, %v1947_v38 }
 0x2c8   : > { %915 = vst.msk [vmem:[%s1614_s26 + $0x18] sm:$0xff] %vm164_vm0, %v899_v34 }
 0x2c9   : > { %913 = vst.msk [vmem:[%s1614_s26 + $0x8] sm:$0xff] %vm164_vm0, %v897_v40  ;;  %v1483_v42 = vpop.f32.mrb[20].mxu0 }
 0x2ca   : > { %v886_v36 = vmax.f32 %v1483_v42, 0.0  ;;  %v833_v37 = vpop.f32.mrb[21].mxu0 }
 0x2cb   : > { %v884_v43 = vmax.f32 %v833_v37, 0.0  ;;  %v1484_v41 = vpop.f32.mrb[22].mxu0 }
 0x2cc   : > { %v902_v35 = vadd.f32 %v886_v36, %v1984_v58  ;;  %v887_v46 = vmax.f32 %v1484_v41, 0.0  ;;  %v836_v39 = vpop.f32.mrb[23].mxu0 }
 0x2cd   : > { %v900_v38 = vadd.f32 %v884_v43, %v1974_v48  ;;  %v885_v47 = vmax.f32 %v836_v39, 0.0 }
 0x2ce   : > { %918 = vst.msk [vmem:[%s1614_s26 + $0x30] sm:$0xff] %vm164_vm0, %v902_v35  ;;  %v903_v50 = vadd.f32 %v887_v46, %v1969_v57  ;;  %v2078_v53 = vld [vmem:[%s1614_s26] sm:$0xff]  ;;  %v2088_v57 = vld [vmem:[%s1614_s26 + $0x10] sm:$0xff] }
 0x2cf   : > { %916 = vst.msk [vmem:[%s1614_s26 + $0x20] sm:$0xff] %vm164_vm0, %v900_v38  ;;  %v901_v51 = vadd.f32 %v885_v47, %v1977_v60  ;;  %v2073_v52 = vld [vmem:[%s1614_s26 + $0x18] sm:$0xff] }
 0x2d0   : > { %919 = vst.msk [vmem:[%s1614_s26 + $0x38] sm:$0xff] %vm164_vm0, %v903_v50  ;;  %v2081_v54 = vld [vmem:[%s1614_s26 + $0x8] sm:$0xff]  ;;  %v945_v59 = vpack.c.bf16 %v2073_v52, %v2088_v57 }
 0x2d1   : > { %917 = vst.msk [vmem:[%s1614_s26 + $0x28] sm:$0xff] %vm164_vm0, %v901_v51  ;;  %v1487_v55 = vpop.f32.mrb[24].mxu0  ;;  %v944_v56 = vpack.c.bf16 %v2081_v54, %v2078_v53 }
 0x2d2   : > { %v890_v48 = vmax.f32 %v1487_v55, 0.0  ;;  %v849_v60 = vpop.f32.mrb[25].mxu0 }
 0x2d3   : > { %v888_v61 = vmax.f32 %v849_v60, 0.0  ;;  %v1488_v58 = vpop.f32.mrb[26].mxu0  ;;  %1507 = vmatprep.mubr.msk.bf16.mxu1 %vm164_vm0, %v944_v56 }
 0x2d4   : > { %v906_v49 = vadd.f32 %v890_v48, %v2014_v13  ;;  %v891_v44 = vmax.f32 %v1488_v58, 0.0  ;;  %v852_v0 = vpop.f32.mrb[27].mxu0  ;;  %1508 = vmatmul.mubr.msk.bf16.vlgmr.msra.gmra.mrb[16].mxu1 %vm164_vm0, %v945_v59 }
 0x2d5   : > { %v904_v2 = vadd.f32 %v888_v61, %v2004_v11  ;;  %v889_v3 = vmax.f32 %v852_v0, 0.0 }
 0x2d6   : > { %922 = vst.msk [vmem:[%s1614_s26 + $0x50] sm:$0xff] %vm164_vm0, %v906_v49  ;;  %v907_v4 = vadd.f32 %v891_v44, %v1999_v10  ;;  %v2108_v7 = vld [vmem:[%s1614_s26 + $0x20] sm:$0xff]  ;;  %v934_v10 = vld [vmem:[%s1614_s26 + $0x30] sm:$0xff] }
 0x2d7   : > { %920 = vst.msk [vmem:[%s1614_s26 + $0x40] sm:$0xff] %vm164_vm0, %v904_v2  ;;  %v905_v5 = vadd.f32 %v889_v3, %v2007_v62  ;;  %v2103_v6 = vld [vmem:[%s1614_s26 + $0x38] sm:$0xff] }
 0x2d8   : > { %923 = vst.msk [vmem:[%s1614_s26 + $0x58] sm:$0xff] %vm164_vm0, %v907_v4  ;;  %v2111_v8 = vld [vmem:[%s1614_s26 + $0x28] sm:$0xff]  ;;  %v947_v12 = vpack.c.bf16 %v2103_v6, %v934_v10 }
 0x2d9   : > { %921 = vst.msk [vmem:[%s1614_s26 + $0x48] sm:$0xff] %vm164_vm0, %v905_v5  ;;  %v1491_v9 = vpop.f32.mrb[28].mxu0  ;;  %v946_v1 = vpack.c.bf16 %v2111_v8, %v2108_v7 }
 0x2da   : > { %v894_v11 = vmax.f32 %v1491_v9, 0.0  ;;  %v865_v62 = vpop.f32.mrb[29].mxu0 }
 0x2db   : > { %v892_v13 = vmax.f32 %v865_v62, 0.0  ;;  %v1492_v45 = vpop.f32.mrb[30].mxu0  ;;  %1511 = vmatprep.mubr.msk.bf16.mxu1 %vm164_vm0, %v946_v1 }
 0x2dc   : > { %v910_v16 = vadd.f32 %v894_v11, %v2032_v17  ;;  %v895_v18 = vmax.f32 %v1492_v45, 0.0  ;;  %v868_v22 = vpop.f32.mrb[31].mxu0  ;;  %1512 = vmatmul.mubr.msk.bf16.gmra.mrb[20].mxu1 %vm164_vm0, %v947_v12 }
 0x2dd   : > { %v908_v23 = vadd.f32 %v892_v13, %v2024_v14  ;;  %v893_v25 = vmax.f32 %v868_v22, 0.0  ;;  %v938_v28 = vld [vmem:[%s1614_s26 + $0x50] sm:$0xff] }
 0x2de   : > { %926 = vst.msk [vmem:[%s1614_s26 + $0x70] sm:$0xff] %vm164_vm0, %v910_v16  ;;  %v911_v26 = vadd.f32 %v895_v18, %v2021_v63  ;;  %v936_v20 = vld [vmem:[%s1614_s26 + $0x40] sm:$0xff] }
 0x2df   : > { %924 = vst.msk [vmem:[%s1614_s26 + $0x60] sm:$0xff] %vm164_vm0, %v908_v23  ;;  %v909_v17 = vadd.f32 %v893_v25, %v2027_v15  ;;  %v939_v24 = vld [vmem:[%s1614_s26 + $0x58] sm:$0xff] }
 0x2e0   : > { %927 = vst.msk [vmem:[%s1614_s26 + $0x78] sm:$0xff] %vm164_vm0, %v911_v26  ;;  %v937_v27 = vld [vmem:[%s1614_s26 + $0x48] sm:$0xff]  ;;  %v949_v29 = vpack.c.bf16 %v939_v24, %v938_v28 }
 0x2e1   : > { %925 = vst.msk [vmem:[%s1614_s26 + $0x68] sm:$0xff] %vm164_vm0, %v909_v17  ;;  %v948_v14 = vpack.c.bf16 %v937_v27, %v936_v20 }
 0x2e3   : > { %1515 = vmatprep.mubr.msk.bf16.mxu1 %vm164_vm0, %v948_v14 }
 0x2e4   : > { %1516 = vmatmul.mubr.msk.bf16.gmra.mrb[24].mxu1 %vm164_vm0, %v949_v29 }
 0x2e5   : > { %v942_v31 = vld [vmem:[%s1614_s26 + $0x70] sm:$0xff] }
 0x2e6   : > { %v2143_v19 = vld [vmem:[%s1614_s26 + $0x60] sm:$0xff] }
 0x2e7   : > { %v2140_v63 = vld [vmem:[%s1614_s26 + $0x78] sm:$0xff] }
 0x2e8   : > { %v2146_v30 = vld [vmem:[%s1614_s26 + $0x68] sm:$0xff]  ;;  %v951_v21 = vpack.c.bf16 %v2140_v63, %v942_v31 }
 0x2e9   : > { %v950_v15 = vpack.c.bf16 %v2146_v30, %v2143_v19 }
 0x2eb   : > { %1519 = vmatprep.mubr.msk.bf16.mxu1 %vm164_vm0, %v950_v15 }
 0x2ec   : > { %1520 = vmatmul.mubr.msk.bf16.gmra.mrb[28].mxu1 %vm164_vm0, %v951_v21 }
 0x3a7   : > { %v1509_v32 = vpop.f32.mrb[16].mxu1 }
 0x3a8   : > { %v1131_v33 = vmax.f32 %v1509_v32, 0.0  ;;  %v1066_v34 = vpop.f32.mrb[17].mxu1 }
 0x3a9   : > { %v1129_v40 = vmax.f32 %v1066_v34, 0.0  ;;  %v1510_v42 = vpop.f32.mrb[18].mxu1 }
 0x3aa   : > { %v1147_v36 = vadd.f32 %v1131_v33, %v2088_v57  ;;  %v1132_v37 = vmax.f32 %v1510_v42, 0.0  ;;  %v1069_v43 = vpop.f32.mrb[19].mxu1 }
 0x3ab   : > { %v1145_v41 = vadd.f32 %v1129_v40, %v2078_v53  ;;  %v1130_v35 = vmax.f32 %v1069_v43, 0.0 }
 0x3ac   : > { %1163 = vst.msk [vmem:[%s1614_s26 + $0x10] sm:$0xff] %vm164_vm0, %v1147_v36  ;;  %v1148_v46 = vadd.f32 %v1132_v37, %v2073_v52 }
 0x3ad   : > { %1161 = vst.msk [vmem:[%s1614_s26] sm:$0xff] %vm164_vm0, %v1145_v41  ;;  %v1146_v39 = vadd.f32 %v1130_v35, %v2081_v54 }
 0x3ae   : > { %1164 = vst.msk [vmem:[%s1614_s26 + $0x18] sm:$0xff] %vm164_vm0, %v1148_v46 }
 0x3af   : > { %1162 = vst.msk [vmem:[%s1614_s26 + $0x8] sm:$0xff] %vm164_vm0, %v1146_v39  ;;  %v1513_v38 = vpop.f32.mrb[20].mxu1 }
 0x3b0   : > { %v1135_v47 = vmax.f32 %v1513_v38, 0.0  ;;  %v1082_v50 = vpop.f32.mrb[21].mxu1 }
 0x3b1   : > { %v1133_v51 = vmax.f32 %v1082_v50, 0.0  ;;  %v1514_v53 = vpop.f32.mrb[22].mxu1 }
 0x3b2   : > { %v1151_v55 = vadd.f32 %v1135_v47, %v934_v10  ;;  %v1136_v56 = vmax.f32 %v1514_v53, 0.0  ;;  %v1085_v57 = vpop.f32.mrb[23].mxu1 }
 0x3b3   : > { %v1149_v52 = vadd.f32 %v1133_v51, %v2108_v7  ;;  %v1134_v48 = vmax.f32 %v1085_v57, 0.0 }
 0x3b4   : > { %1167 = vst.msk [vmem:[%s1614_s26 + $0x30] sm:$0xff] %vm164_vm0, %v1151_v55  ;;  %v1152_v54 = vadd.f32 %v1136_v56, %v2103_v6 }
 0x3b5   : > { %1165 = vst.msk [vmem:[%s1614_s26 + $0x20] sm:$0xff] %vm164_vm0, %v1149_v52  ;;  %v1150_v60 = vadd.f32 %v1134_v48, %v2111_v8 }
 0x3b6   : > { %1168 = vst.msk [vmem:[%s1614_s26 + $0x38] sm:$0xff] %vm164_vm0, %v1152_v54 }
 0x3b7   : > { %1166 = vst.msk [vmem:[%s1614_s26 + $0x28] sm:$0xff] %vm164_vm0, %v1150_v60  ;;  %v1517_v59 = vpop.f32.mrb[24].mxu1 }
 0x3b8   : > { %v1139_v61 = vmax.f32 %v1517_v59, 0.0  ;;  %v1098_v58 = vpop.f32.mrb[25].mxu1 }
 0x3b9   : > { %v1137_v49 = vmax.f32 %v1098_v58, 0.0  ;;  %v1518_v44 = vpop.f32.mrb[26].mxu1 }
 0x3ba   : > { %v1155_v0 = vadd.f32 %v1139_v61, %v938_v28  ;;  %v1140_v2 = vmax.f32 %v1518_v44, 0.0  ;;  %v1101_v3 = vpop.f32.mrb[27].mxu1 }
 0x3bb   : > { %v1153_v4 = vadd.f32 %v1137_v49, %v936_v20  ;;  %v1138_v5 = vmax.f32 %v1101_v3, 0.0 }
 0x3bc   : > { %1171 = vst.msk [vmem:[%s1614_s26 + $0x50] sm:$0xff] %vm164_vm0, %v1155_v0  ;;  %v1156_v6 = vadd.f32 %v1140_v2, %v939_v24 }
 0x3bd   : > { %1169 = vst.msk [vmem:[%s1614_s26 + $0x40] sm:$0xff] %vm164_vm0, %v1153_v4  ;;  %v1154_v7 = vadd.f32 %v1138_v5, %v937_v27 }
 0x3be   : > { %1172 = vst.msk [vmem:[%s1614_s26 + $0x58] sm:$0xff] %vm164_vm0, %v1156_v6 }
 0x3bf   : > { %1170 = vst.msk [vmem:[%s1614_s26 + $0x48] sm:$0xff] %vm164_vm0, %v1154_v7  ;;  %v1521_v8 = vpop.f32.mrb[28].mxu1 }
 0x3c0   : > { %v1143_v9 = vmax.f32 %v1521_v8, 0.0  ;;  %v1114_v1 = vpop.f32.mrb[29].mxu1 }
 0x3c1   : > { %v1141_v10 = vmax.f32 %v1114_v1, 0.0  ;;  %v1522_v11 = vpop.f32.mrb[30].mxu1 }
 0x3c2   : > { %v1159_v62 = vadd.f32 %v1143_v9, %v942_v31  ;;  %v1144_v12 = vmax.f32 %v1522_v11, 0.0  ;;  %v1117_v13 = vpop.f32.mrb[31].mxu1 }
 0x3c3   : > { %v1157_v45 = vadd.f32 %v1141_v10, %v2143_v19  ;;  %v1142_v16 = vmax.f32 %v1117_v13, 0.0 }
 0x3c4   : > { %1175 = vst.msk [vmem:[%s1614_s26 + $0x70] sm:$0xff] %vm164_vm0, %v1159_v62  ;;  %v1160_v18 = vadd.f32 %v1144_v12, %v2140_v63 }
 0x3c5   : > { %1173 = vst.msk [vmem:[%s1614_s26 + $0x60] sm:$0xff] %vm164_vm0, %v1157_v45  ;;  %v1158_v22 = vadd.f32 %v1142_v16, %v2146_v30 }
 0x3c6   : > { %1176 = vst.msk [vmem:[%s1614_s26 + $0x78] sm:$0xff] %vm164_vm0, %v1160_v18 }
 0x3c7   : > { %1174 = vst.msk [vmem:[%s1614_s26 + $0x68] sm:$0xff] %vm164_vm0, %v1158_v22 }
 0x3c8 PF: > { %s12_s9 = sadd.s32 1, %s1569_s9  }
 0x3c9   : > { %p9_p4 = scmp.ge.s32.totalorder %s12_s9, 4  }
 0x3cb   :  { %11 = sbr.rel (!%p9_p4) target bundleno = 1 (0x1), region = 61 }

</bundles_post_ra>
